<compile_context>
chip_gen: v7x
topology: tpu7x:2x2x1
jax: 0.10.0
libtpu: 0.0.40
codegen_flags: <defaults>
</compile_context>

<pallas_src>
import jax
import jax.numpy as jnp
from jax.experimental import pallas as pl
from jax.experimental.pallas import tpu as pltpu


# ---------------------------------------------------------------------------
# Kernel
# ---------------------------------------------------------------------------
def transferer_kernel(
    z_ref,                 # (TB, L)   - dtype already matches the weights
    w1_ref, b1_ref,        # fused z-stage:     (L, 2T+L), (1, 2T+L)
    w2_ref, b2_ref,        # fused hidden-stage (block-diag): (2T, 2L), (1, 2L)
    wsig_ref, bsig_ref,    # lin_sig:           (L, L), (1, L)
    out_ref,               # (TB, 2L)  ->  [ mu | sigma ]
):
    L = wsig_ref.shape[0]
    T2 = w2_ref.shape[0]                       # 2 * transfer_dim
    cdt = w1_ref.dtype                         # MXU operand dtype (f32 or bf16)

    z = z_ref[...]                             # cast to cdt hoisted to wrapper

    # ---- stage 1: z @ [w_gz | w_pz | w_mu] ------------------------------------
    s1 = jnp.dot(z, w1_ref[...], preferred_element_type=jnp.float32) + b1_ref[...]
    h = jnp.maximum(s1[:, :T2], 0.0)           # relu'd gate/pm hidden, (TB, 2T)
    mu_lin = s1[:, T2:]                        # lin_z_to_mu(z),        (TB, L)

    # ---- stage 2: [gate_h | pm_h] @ blockdiag(w_gh, w_ph) ---------------------
    s2 = (jnp.dot(h.astype(cdt), w2_ref[...], preferred_element_type=jnp.float32)
          + b2_ref[...])
    gate_logit = s2[:, :L]
    proposed_mean = s2[:, L:]

    # gate = sigmoid(gate_logit), tanh-based (stable, EUP slot)
    gate = 0.5 * (jnp.tanh(0.5 * gate_logit) + 1.0)

    # mu = (1 - gate) * lin_z_to_mu(z) + gate * proposed_mean
    mu = (1.0 - gate) * mu_lin + gate * proposed_mean

    # sigma = softplus(lin_sig(relu(proposed_mean)))
    sig_logit = (jnp.dot(jnp.maximum(proposed_mean, 0.0).astype(cdt), wsig_ref[...],
                         preferred_element_type=jnp.float32)
                 + bsig_ref[...])
    sigma = jnp.maximum(sig_logit, 0.0) + jnp.log1p(jnp.exp(-jnp.abs(sig_logit)))

    out_ref[...] = jnp.concatenate([mu, sigma], axis=-1).astype(out_ref.dtype)


# ---------------------------------------------------------------------------
# One-time weight prep (hoisted out of the per-call path)
# ---------------------------------------------------------------------------
def prepare_params(params, *, matmul_dtype=jnp.float32):
    """Fuse + pre-transpose the PyTorch-convention (out, in) weights.

    matmul_dtype: f32 is exact; bf16 MXU operands are supported on every
    generation (v5e/v6e/v7x) and halve the weight + z HBM/VMEM traffic.
    Biases and the VPU/EUP epilogue always stay f32.
    """
    T = params["w_gz"].shape[0]

    # z-stage: (L, 2T + L) = [w_gz^T | w_pz^T | w_mu^T]
    w1 = jnp.concatenate(
        [params["w_gz"].T, params["w_pz"].T, params["w_mu"].T], axis=1)
    b1 = jnp.concatenate(
        [params["b_gz"], params["b_pz"], params["b_mu"]]).reshape(1, -1)

    # hidden-stage: block-diagonal (2T, 2L) = diag(w_gh^T, w_ph^T)
    # (128-deep contraction exactly fills the v5e MXU; do not pad K further)
    w_gh_t = params["w_gh"].T                  # (T, L)
    w_ph_t = params["w_ph"].T                  # (T, L)
    zeros = jnp.zeros((T, w_gh_t.shape[1]), w_gh_t.dtype)
    w2 = jnp.concatenate(
        [jnp.concatenate([w_gh_t, zeros], axis=1),
         jnp.concatenate([zeros, w_ph_t], axis=1)], axis=0)
    b2 = jnp.concatenate([params["b_gh"], params["b_ph"]]).reshape(1, -1)

    return {
        "w1": w1.astype(matmul_dtype),
        "b1": b1.astype(jnp.float32),
        "w2": w2.astype(matmul_dtype),
        "b2": b2.astype(jnp.float32),
        "wsig": params["w_sig"].T.astype(matmul_dtype),
        "bsig": params["b_sig"].reshape(1, -1).astype(jnp.float32),
    }


# ---------------------------------------------------------------------------
# Batch tiling: big sublane-aligned tiles, >=2-step (even) grid, batch padding
# ---------------------------------------------------------------------------
def _round_up(x, m):
    return ((x + m - 1) // m) * m


def _batch_tiling(batch, max_tile):
    """Returns (padded_batch, tile_rows, grid_steps)."""
    if batch <= 16:
        # Tiny batch: one full-extent tile (always a legal block shape).
        return batch, batch, 1
    steps = max(2, -(-batch // max_tile))      # >= 2 so both v7x TCs get work
    steps = _round_up(steps, 2)                # even grid splits cleanly across TCs
    tile = _round_up(-(-batch // steps), 8)    # sublane-aligned tile rows
    return steps * tile, tile, steps


# ---------------------------------------------------------------------------
# Forward
# ---------------------------------------------------------------------------
def transferer_forward(z_t_1, prep, *, out_dtype=jnp.float32, max_batch_tile=4096):
    B, L = z_t_1.shape
    two_t_plus_l = prep["w1"].shape[1]
    T = (two_t_plus_l - L) // 2

    bpad, TB, steps = _batch_tiling(B, max_batch_tile)

    # Stream z at the MXU operand dtype (bf16 halves the input HBM stream);
    # pad the batch up to the grid extent instead of shrinking the tile.
    z_in = z_t_1.astype(prep["w1"].dtype)
    if bpad != B:
        z_in = jnp.pad(z_in, ((0, bpad - B), (0, 0)))

    def resident(shape):
        # weights/biases: whole array resident in VMEM, never re-DMA'd over grid
        return pl.BlockSpec(shape, lambda i: (0,) * len(shape))

    w_bytes = sum(int(prep[k].size) * prep[k].dtype.itemsize
                  for k in ("w1", "b1", "w2", "b2", "wsig", "bsig"))
    cost = pl.CostEstimate(
        flops=2 * bpad * (L * (2 * T + L) + (2 * T) * (2 * L) + L * L),
        transcendentals=3 * bpad * L,                    # tanh + exp + log1p
        bytes_accessed=(w_bytes
                        + bpad * L * z_in.dtype.itemsize
                        + bpad * 2 * L * jnp.dtype(out_dtype).itemsize),
    )

    out = pl.pallas_call(
        transferer_kernel,
        out_shape=jax.ShapeDtypeStruct((bpad, 2 * L), out_dtype),
        grid=(steps,),
        in_specs=[
            pl.BlockSpec((TB, L), lambda i: (i, 0)),
            resident(prep["w1"].shape), resident(prep["b1"].shape),
            resident(prep["w2"].shape), resident(prep["b2"].shape),
            resident(prep["wsig"].shape), resident(prep["bsig"].shape),
        ],
        out_specs=pl.BlockSpec((TB, 2 * L), lambda i: (i, 0)),
        compiler_params=pltpu.CompilerParams(
            dimension_semantics=("parallel",),
            # Large batch tiles need more than v5e's 16 MiB scoped default;
            # 32 MiB is valid on every generation (v7x physical = 64 MiB).
            vmem_limit_bytes=32 * 1024 * 1024,
        ),
        cost_estimate=cost,
    )(z_in, prep["w1"], prep["b1"], prep["w2"], prep["b2"],
      prep["wsig"], prep["bsig"])

    out = out[:B]                              # drop batch-padding rows
    return out[:, :L], out[:, L:]


# ---------------------------------------------------------------------------
# Params / reference
# ---------------------------------------------------------------------------
def init_params(key, latent_dim, transfer_dim):
    """Deterministic synthetic init (PyTorch convention: weight shape (out, in))."""
    ks = jax.random.split(key, 10)

    def u(k, shape, fan_in):
        bound = 1.0 / jnp.sqrt(fan_in)
        return jax.random.uniform(k, shape, jnp.float32, -bound, bound)

    L, T = latent_dim, transfer_dim
    return {
        "w_gz": u(ks[0], (T, L), L), "b_gz": u(ks[1], (T,), L),
        "w_gh": u(ks[2], (L, T), T), "b_gh": u(ks[3], (L,), T),
        "w_pz": u(ks[4], (T, L), L), "b_pz": u(ks[5], (T,), L),
        "w_ph": u(ks[6], (L, T), T), "b_ph": u(ks[7], (L,), T),
        "w_sig": u(ks[8], (L, L), L), "b_sig": u(ks[9], (L,), L),
        # lin_z_to_mu initialized to identity / zero as in the PyTorch module
        "w_mu": jnp.eye(L, dtype=jnp.float32),
        "b_mu": jnp.zeros((L,), jnp.float32),
    }


def reference_forward(z, p):
    """Pure-JAX reference mirroring the PyTorch forward."""
    lin = lambda x, w, b: x @ w.T + b
    gate_h = jax.nn.relu(lin(z, p["w_gz"], p["b_gz"]))
    gate = jax.nn.sigmoid(lin(gate_h, p["w_gh"], p["b_gh"]))
    pm_h = jax.nn.relu(lin(z, p["w_pz"], p["b_pz"]))
    pm = lin(pm_h, p["w_ph"], p["b_ph"])
    mu = (1.0 - gate) * lin(z, p["w_mu"], p["b_mu"]) + gate * pm
    sigma = jax.nn.softplus(lin(jax.nn.relu(pm), p["w_sig"], p["b_sig"]))
    return mu, sigma


# ---------------------------------------------------------------------------
# Main
# ---------------------------------------------------------------------------
if __name__ == "__main__":
    latent_dim = 32
    transfer_dim = 64

    key = jax.random.PRNGKey(0)
    k_z1, k_z2, k_p = jax.random.split(key, 3)
    params = init_params(k_p, latent_dim, transfer_dim)

    # batch=8   -> single full-extent tile path
    # batch=100 -> batch-padding path + 2-step "parallel" grid (v7x both TCs)
    z_small = jax.random.normal(k_z1, (8, latent_dim), jnp.float32)
    z_odd = jax.random.normal(k_z2, (100, latent_dim), jnp.float32)

    fwd = jax.jit(transferer_forward,
                  static_argnames=("out_dtype", "max_batch_tile"))

    # --- f32 MXU operands (exact path, all chip generations) -----------------
    prep_f32 = prepare_params(params, matmul_dtype=jnp.float32)
    for z in (z_small, z_odd):
        mu_ref, sigma_ref = reference_forward(z, params)
        mu, sigma = jax.block_until_ready(fwd(z, prep_f32))
        assert mu.shape == z.shape and sigma.shape == z.shape
        assert jnp.allclose(mu, mu_ref, atol=1e-4, rtol=1e-4), "mu mismatch (f32)"
        assert jnp.allclose(sigma, sigma_ref, atol=1e-4, rtol=1e-4), "sigma mismatch (f32)"

    # --- bf16 z/weight/output streams, f32 accumulation + epilogue -----------
    prep_bf16 = prepare_params(params, matmul_dtype=jnp.bfloat16)
    mu_ref, sigma_ref = reference_forward(z_odd, params)
    mu16, sigma16 = jax.block_until_ready(
        fwd(z_odd, prep_bf16, out_dtype=jnp.bfloat16))
    assert jnp.allclose(mu16.astype(jnp.float32), mu_ref,
                        atol=1e-1, rtol=1e-1), "mu mismatch (bf16)"
    assert jnp.allclose(sigma16.astype(jnp.float32), sigma_ref,
                        atol=1e-1, rtol=1e-1), "sigma mismatch (bf16)"

    print("KERNEL_OK")
</pallas_src>

<mosaic_0001>
module attributes {stable_mosaic.version = 11 : i64} {
  func.func @transferer_kernel(%arg0: i32, %arg1: memref<8x32xf32, #tpu.memory_space<vmem>>, %arg2: memref<32x160xf32, #tpu.memory_space<vmem>>, %arg3: memref<1x160xf32, #tpu.memory_space<vmem>>, %arg4: memref<128x64xf32, #tpu.memory_space<vmem>>, %arg5: memref<1x64xf32, #tpu.memory_space<vmem>>, %arg6: memref<32x32xf32, #tpu.memory_space<vmem>>, %arg7: memref<1x32xf32, #tpu.memory_space<vmem>>, %arg8: memref<8x64xf32, #tpu.memory_space<vmem>>) attributes {dimension_semantics = [#tpu.dimension_semantics<parallel>], iteration_bounds = array<i64: 1>, scalar_prefetch = 0 : i64, scratch_operands = 0 : i64, tpu.core_type = #tpu.core_type<tc>, window_params = [{transform_indices = @transform_0, window_bounds = array<i64: 8, 32>}, {pipeline_mode = #tpu.pipeline_mode<synchronous>, transform_indices = @transform_1, window_bounds = array<i64: 32, 160>}, {pipeline_mode = #tpu.pipeline_mode<synchronous>, transform_indices = @transform_2, window_bounds = array<i64: 1, 160>}, {pipeline_mode = #tpu.pipeline_mode<synchronous>, transform_indices = @transform_3, window_bounds = array<i64: 128, 64>}, {pipeline_mode = #tpu.pipeline_mode<synchronous>, transform_indices = @transform_4, window_bounds = array<i64: 1, 64>}, {pipeline_mode = #tpu.pipeline_mode<synchronous>, transform_indices = @transform_5, window_bounds = array<i64: 32, 32>}, {pipeline_mode = #tpu.pipeline_mode<synchronous>, transform_indices = @transform_6, window_bounds = array<i64: 1, 32>}, {transform_indices = @transform_7, window_bounds = array<i64: 8, 64>}]} {
    %c0 = arith.constant 0 : index
    %c0_0 = arith.constant 0 : index
    %0 = vector.load %arg1[%c0, %c0_0] : memref<8x32xf32, #tpu.memory_space<vmem>>, vector<8x32xf32>
    %c0_1 = arith.constant 0 : index
    %c0_2 = arith.constant 0 : index
    %1 = vector.load %arg2[%c0_1, %c0_2] : memref<32x160xf32, #tpu.memory_space<vmem>>, vector<32x160xf32>
    %cst = arith.constant dense<0.000000e+00> : vector<8x160xf32>
    %2 = tpu.matmul %0, %1, %cst {dimension_numbers = #tpu.dot_dimension_numbers<[1], [0], [0], [1], [0, 0, 1, 1], [], []>} : vector<8x32xf32>, vector<32x160xf32>, vector<8x160xf32> -> vector<8x160xf32>
    %c0_3 = arith.constant 0 : index
    %c0_4 = arith.constant 0 : index
    %3 = vector.load %arg3[%c0_3, %c0_4] : memref<1x160xf32, #tpu.memory_space<vmem>>, vector<1x160xf32>
    %4 = vector.broadcast %3 : vector<1x160xf32> to vector<8x160xf32>
    %5 = arith.addf %2, %4 : vector<8x160xf32>
    %6 = vector.extract_strided_slice %5 {offsets = [0, 0], sizes = [8, 128], strides = [1, 1]} : vector<8x160xf32> to vector<8x128xf32>
    %cst_5 = arith.constant 0.000000e+00 : f32
    %7 = vector.broadcast %cst_5 : f32 to vector<8x128xf32>
    %8 = arith.maximumf %6, %7 : vector<8x128xf32>
    %9 = vector.extract_strided_slice %5 {offsets = [0, 128], sizes = [8, 32], strides = [1, 1]} : vector<8x160xf32> to vector<8x32xf32>
    %c0_6 = arith.constant 0 : index
    %c0_7 = arith.constant 0 : index
    %10 = vector.load %arg4[%c0_6, %c0_7] : memref<128x64xf32, #tpu.memory_space<vmem>>, vector<128x64xf32>
    %cst_8 = arith.constant dense<0.000000e+00> : vector<8x64xf32>
    %11 = tpu.matmul %8, %10, %cst_8 {dimension_numbers = #tpu.dot_dimension_numbers<[1], [0], [0], [1], [0, 0, 1, 1], [], []>} : vector<8x128xf32>, vector<128x64xf32>, vector<8x64xf32> -> vector<8x64xf32>
    %c0_9 = arith.constant 0 : index
    %c0_10 = arith.constant 0 : index
    %12 = vector.load %arg5[%c0_9, %c0_10] : memref<1x64xf32, #tpu.memory_space<vmem>>, vector<1x64xf32>
    %13 = vector.broadcast %12 : vector<1x64xf32> to vector<8x64xf32>
    %14 = arith.addf %11, %13 : vector<8x64xf32>
    %15 = vector.extract_strided_slice %14 {offsets = [0, 0], sizes = [8, 32], strides = [1, 1]} : vector<8x64xf32> to vector<8x32xf32>
    %16 = vector.extract_strided_slice %14 {offsets = [0, 32], sizes = [8, 32], strides = [1, 1]} : vector<8x64xf32> to vector<8x32xf32>
    %cst_11 = arith.constant 5.000000e-01 : f32
    %17 = vector.broadcast %cst_11 : f32 to vector<8x32xf32>
    %18 = arith.mulf %17, %15 : vector<8x32xf32>
    %19 = math.tanh %18 : vector<8x32xf32>
    %cst_12 = arith.constant 1.000000e+00 : f32
    %20 = vector.broadcast %cst_12 : f32 to vector<8x32xf32>
    %21 = arith.addf %19, %20 : vector<8x32xf32>
    %cst_13 = arith.constant 5.000000e-01 : f32
    %22 = vector.broadcast %cst_13 : f32 to vector<8x32xf32>
    %23 = arith.mulf %22, %21 : vector<8x32xf32>
    %cst_14 = arith.constant 1.000000e+00 : f32
    %24 = vector.broadcast %cst_14 : f32 to vector<8x32xf32>
    %25 = arith.subf %24, %23 : vector<8x32xf32>
    %26 = arith.mulf %25, %9 : vector<8x32xf32>
    %27 = arith.mulf %23, %16 : vector<8x32xf32>
    %28 = arith.addf %26, %27 : vector<8x32xf32>
    %cst_15 = arith.constant 0.000000e+00 : f32
    %29 = vector.broadcast %cst_15 : f32 to vector<8x32xf32>
    %30 = arith.maximumf %16, %29 : vector<8x32xf32>
    %c0_16 = arith.constant 0 : index
    %c0_17 = arith.constant 0 : index
    %31 = vector.load %arg6[%c0_16, %c0_17] : memref<32x32xf32, #tpu.memory_space<vmem>>, vector<32x32xf32>
    %cst_18 = arith.constant dense<0.000000e+00> : vector<8x32xf32>
    %32 = tpu.matmul %30, %31, %cst_18 {dimension_numbers = #tpu.dot_dimension_numbers<[1], [0], [0], [1], [0, 0, 1, 1], [], []>} : vector<8x32xf32>, vector<32x32xf32>, vector<8x32xf32> -> vector<8x32xf32>
    %c0_19 = arith.constant 0 : index
    %c0_20 = arith.constant 0 : index
    %33 = vector.load %arg7[%c0_19, %c0_20] : memref<1x32xf32, #tpu.memory_space<vmem>>, vector<1x32xf32>
    %34 = vector.broadcast %33 : vector<1x32xf32> to vector<8x32xf32>
    %35 = arith.addf %32, %34 : vector<8x32xf32>
    %cst_21 = arith.constant 0.000000e+00 : f32
    %36 = vector.broadcast %cst_21 : f32 to vector<8x32xf32>
    %37 = arith.maximumf %35, %36 : vector<8x32xf32>
    %38 = math.absf %35 : vector<8x32xf32>
    %cst_22 = arith.constant 0.000000e+00 : f32
    %39 = vector.broadcast %cst_22 : f32 to vector<8x32xf32>
    %40 = arith.subf %39, %38 : vector<8x32xf32>
    %41 = math.exp %40 : vector<8x32xf32>
    %42 = math.log1p %41 : vector<8x32xf32>
    %43 = arith.addf %37, %42 : vector<8x32xf32>
    %44 = tpu.concatenate %28, %43 in 1 : vector<8x32xf32>, vector<8x32xf32> -> vector<8x64xf32>
    %c0_23 = arith.constant 0 : index
    %c0_24 = arith.constant 0 : index
    %45 = vector.load %arg8[%c0_23, %c0_24] : memref<8x64xf32, #tpu.memory_space<vmem>>, vector<8x64xf32>
    tpu.vector_store %arg8[%c0_23, %c0_24], %44 {strides = array<i32>} : memref<8x64xf32, #tpu.memory_space<vmem>>, vector<8x64xf32>,
    return
  }
  func.func @transform_0(%arg0: i32) -> (i32, i32) {
    %c0_i32 = arith.constant 0 : i32
    %c0_i32_0 = arith.constant 0 : i32
    return %arg0, %c0_i32 : i32, i32
  }
  func.func @transform_1(%arg0: i32) -> (i32, i32) {
    %c0_i32 = arith.constant 0 : i32
    %c0_i32_0 = arith.constant 0 : i32
    %c0_i32_1 = arith.constant 0 : i32
    return %c0_i32, %c0_i32_0 : i32, i32
  }
  func.func @transform_2(%arg0: i32) -> (i32, i32) {
    %c0_i32 = arith.constant 0 : i32
    %c0_i32_0 = arith.constant 0 : i32
    %c0_i32_1 = arith.constant 0 : i32
    return %c0_i32, %c0_i32_0 : i32, i32
  }
  func.func @transform_3(%arg0: i32) -> (i32, i32) {
    %c0_i32 = arith.constant 0 : i32
    %c0_i32_0 = arith.constant 0 : i32
    %c0_i32_1 = arith.constant 0 : i32
    return %c0_i32, %c0_i32_0 : i32, i32
  }
  func.func @transform_4(%arg0: i32) -> (i32, i32) {
    %c0_i32 = arith.constant 0 : i32
    %c0_i32_0 = arith.constant 0 : i32
    %c0_i32_1 = arith.constant 0 : i32
    return %c0_i32, %c0_i32_0 : i32, i32
  }
  func.func @transform_5(%arg0: i32) -> (i32, i32) {
    %c0_i32 = arith.constant 0 : i32
    %c0_i32_0 = arith.constant 0 : i32
    %c0_i32_1 = arith.constant 0 : i32
    return %c0_i32, %c0_i32_0 : i32, i32
  }
  func.func @transform_6(%arg0: i32) -> (i32, i32) {
    %c0_i32 = arith.constant 0 : i32
    %c0_i32_0 = arith.constant 0 : i32
    %c0_i32_1 = arith.constant 0 : i32
    return %c0_i32, %c0_i32_0 : i32, i32
  }
  func.func @transform_7(%arg0: i32) -> (i32, i32) {
    %c0_i32 = arith.constant 0 : i32
    %c0_i32_0 = arith.constant 0 : i32
    return %arg0, %c0_i32 : i32, i32
  }
}

</mosaic_0001>

<bundles_post_ra>
// kernel: transferer_forward.1
= control target key start
LH: loop header
LB: loop body
LE: loop exit
PB: predicated region body
PF: predicated region fallthrough
CT: control target
= control target key end

     0   :  { %v462_v3 = vmov 0.0   ;;  %v463_v4 = vmov 0.0|0.0   ;;  %vm47_vm0 = vcmask 261120   ;;  %vm464_vm1 = vmmov 0   ;;  %s465_s11 = smov 96   ;;  %s622_s1 = inlined_call_operand.vmem [shape: f32[32,160], index: 1, kind: input, shape index: {}]   ;;  %s623_s3 = inlined_call_operand.vmem [shape: f32[128,64], index: 3, kind: input, shape index: {}]   ;;  %s624_s0 = inlined_call_operand.vmem [shape: f32[8,32], index: 0, kind: input, shape index: {}]   ;;  %s625_s2 = inlined_call_operand.vmem [shape: f32[1,160], index: 2, kind: input, shape index: {}]   ;;  %s626_s5 = inlined_call_operand.vmem [shape: f32[32,32], index: 5, kind: input, shape index: {}]   ;;  %s627_s4 = inlined_call_operand.vmem [shape: f32[1,64], index: 4, kind: input, shape index: {}]   ;;  %s628_s6 = inlined_call_operand.vmem [shape: f32[1,32], index: 6, kind: input, shape index: {}]   ;;  %s629_s7 = inlined_call_operand.vmem [shape: f32[8,64], index: 7, kind: output, shape index: {}]  }
   0x1   :  { %v28_v0 = vld [vmem:[%s622_s1 + $0x8] sm:$0xff]  ;;  %v30_v1 = vld [vmem:[%s622_s1 + $0x18] sm:$0xff]  ;;  %v27_v2 = vld [vmem:[%s622_s1] sm:$0xff]  ;;  %115 = vmatprep.mubr.f32.mxu0 %v462_v3  ;;  %421 = vmatprep.subr.bf16.mxu1 %v463_v4  ;;  %v37_v39 = vlaneseq  ;;  %vm335_vm3 = vcmask 523264  }
   0x2   :  { %v413_v5 = vpack.c.bf16 %v30_v1, %v28_v0  ;;  %v29_v6 = vld [vmem:[%s622_s1 + $0x10] sm:$0xff]  ;;  %v32_v7 = vld [vmem:[%s622_s1 + $0x28] sm:$0xff]  ;;  %v34_v8 = vld [vmem:[%s622_s1 + $0x38] sm:$0xff]  ;;  %399 = vmatprep.mubr.msk.f32.mxu1 %vm464_vm1, %v462_v3 }
   0x3   :  { %v415_v9 = vpack.c.bf16 %v29_v6, %v27_v2  ;;  %v417_v10 = vpack.c.bf16 %v34_v8, %v32_v7  ;;  %v31_v11 = vld [vmem:[%s622_s1 + $0x20] sm:$0xff]  ;;  %v33_v12 = vld [vmem:[%s622_s1 + $0x30] sm:$0xff]  ;;  %v124_v14 = vld [vmem:[%s623_s3 + $0x8] sm:$0xff]  ;;  %v38_v40 = vshrl.u32 %v37_v39, 7 }
   0x4   :  { %414 = vmatprep.subr.bf16.mxu0 %v413_v5  ;;  %v123_v13 = vld [vmem:[%s623_s3] sm:$0xff]  ;;  %v125_v15 = vld [vmem:[%s623_s3 + $0x10] sm:$0xff]  ;;  %v419_v16 = vpack.c.bf16 %v33_v12, %v31_v11  ;;  %v126_v18 = vld [vmem:[%s623_s3 + $0x18] sm:$0xff] }
   0x5   :  { %416 = vmatpush1.bf16.msra.mxu0 %v415_v9  ;;  %v422_v17 = vpack.c.bf16 %v124_v14, %v123_v13  ;;  %v425_v19 = vpack.c.bf16 %v126_v18, %v125_v15  ;;  %v127_v20 = vld [vmem:[%s623_s3 + $0x20] sm:$0xff]  ;;  %v128_v21 = vld [vmem:[%s623_s3 + $0x28] sm:$0xff]  ;;  %v129_v24 = vld [vmem:[%s623_s3 + $0x30] sm:$0xff]  ;;  %v39_v41 = vsub.s32 0, %v38_v40  ;;  %v43_v60 = vsub.s32 1, %v38_v40 }
   0x6   :  { %418 = vmatprep.subr.bf16.mxu0 %v417_v10  ;;  %v26_v22 = vld [vmem:[%s624_s0] sm:$0xff]  ;;  %v428_v23 = vpack.c.bf16 %v128_v21, %v127_v20  ;;  %v130_v25 = vld [vmem:[%s623_s3 + $0x38] sm:$0xff]  ;;  %v132_v28 = vld [vmem:[%s623_s3 + $0x48] sm:$0xff] }
   0x7   :  { %423 = vmatpush3.bf16.msra.mxu1 %v422_v17  ;;  %v431_v26 = vpack.c.bf16 %v130_v25, %v129_v24  ;;  %v131_v27 = vld [vmem:[%s623_s3 + $0x40] sm:$0xff]  ;;  %v133_v30 = vld [vmem:[%s623_s3 + $0x50] sm:$0xff]  ;;  %v134_v31 = vld [vmem:[%s623_s3 + $0x58] sm:$0xff] }
   0x8   :  { %424 = vmatprep.subr.bf16.mxu1 %v463_v4  ;;  %v434_v29 = vpack.c.bf16 %v132_v28, %v131_v27  ;;  %v437_v32 = vpack.c.bf16 %v134_v31, %v133_v30  ;;  %v135_v33 = vld [vmem:[%s623_s3 + $0x60] sm:$0xff]  ;;  %v136_v34 = vld [vmem:[%s623_s3 + $0x68] sm:$0xff]  ;;  %v137_v36 = vld [vmem:[%s623_s3 + $0x70] sm:$0xff] }
   0x9   :  { %420 = vmatpush1.bf16.msra.mxu0 %v419_v16  ;;  %v440_v35 = vpack.c.bf16 %v136_v34, %v135_v33  ;;  %v138_v37 = vld [vmem:[%s623_s3 + $0x78] sm:$0xff]  ;;  %v35_v42 = vld [vmem:[%s625_s2] sm:$0x3]  ;;  %v230_v49 = vld [vmem:[%s626_s5 + $0x8] sm:$0xff] }
   0xa   :  { %445 = vmatprep.subr.bf16.mxu0 %v463_v4  ;;  %v443_v38 = vpack.c.bf16 %v138_v37, %v137_v36  ;;  %v40_v43 = vrot.slane %v35_v42, %v39_v41  ;;  %v229_v48 = vld [vmem:[%s626_s5] sm:$0xff]  ;;  %v231_v50 = vld [vmem:[%s626_s5 + $0x10] sm:$0xff]  ;;  %v232_v52 = vld [vmem:[%s626_s5 + $0x18] sm:$0xff]  ;;  %v44_v62 = vrot.slane %v35_v42, %v43_v60 }
   0xb   :  { %426 = vmatpush3.bf16.msra.mxu1 %v425_v19  ;;  %v446_v51 = vpack.c.bf16 %v230_v49, %v229_v48  ;;  %v449_v53 = vpack.c.bf16 %v232_v52, %v231_v50  ;;  %v342_v54 = vld [vmem:[%s627_s4] ss:$0 sm:$0xff] }
   0xc   :  { %341 = vmatmul.mubr.msk.f32.vlgmr.msra.gmra.mrb[0].mxu0 %vm47_vm0, %v26_v22  ;;  %427 = vmatprep.subr.bf16.mxu1 %v463_v4  ;;  %v343_v8 = vld [vmem:[%s628_s6] ss:$0 sm:$0xff]  ;;  %s466_s6 = smov 32  }
   0xd   :  { %410 = vmatprep.mubr.msk.f32.mxu0 %vm464_vm1, %v462_v3  ;;  %447 = vmatpush3.bf16.msra.mxu0 %v446_v51 }
   0xe   :  { %448 = vmatprep.subr.bf16.mxu0 %v463_v4 }
   0xf   :  { %429 = vmatpush3.bf16.msra.mxu1 %v428_v23 }
  0x10   :  { %430 = vmatprep.subr.bf16.mxu1 %v463_v4 }
  0x11   :  { %450 = vmatpush3.bf16.msra.mxu0 %v449_v53 }
  0x13   :  { %432 = vmatpush3.bf16.msra.mxu1 %v431_v26 }
  0x14   :  { %433 = vmatprep.subr.bf16.mxu1 %v463_v4 }
  0x17   :  { %435 = vmatpush3.bf16.msra.mxu1 %v434_v29 }
  0x18   :  { %436 = vmatprep.subr.bf16.mxu1 %v463_v4 }
  0x1b   :  { %438 = vmatpush3.bf16.msra.mxu1 %v437_v32 }
  0x1c   :  { %439 = vmatprep.subr.bf16.mxu1 %v463_v4 }
  0x1f   :  { %441 = vmatpush3.bf16.msra.mxu1 %v440_v35 }
  0x20   :  { %442 = vmatprep.subr.bf16.mxu1 %v463_v4 }
  0x23   :  { %444 = vmatpush3.bf16.msra.mxu1 %v443_v38 }
  0xdf   :  { %v117_v44 = vpop.f32.mrb[0].mxu0 }
  0xe0   :  { %v118_v45 = vadd.f32 %v117_v44, %v40_v43  ;;  %v119_v46 = vpop.f32.mrb[1].mxu0 }
  0xe1   :  { %v120_v1 = vadd.f32 %v119_v46, %v44_v62 }
  0xe2   :  { %v122_v47 = vmax.f32 %v118_v45, 0.0 }
  0xe4   :  { %400 = vmatmul.mubr.f32.vlgmr.msra.gmra.mrb[0].mxu1 %v122_v47 }
 0x1b7   :  { %v212_v55 = vpop.f32.mrb[0].mxu1 }
 0x1b8   :  { %v213_v56 = vadd.f32 %v342_v54, %v212_v55  ;;  %v401_v57 = vpop.f32.mrb[1].mxu1 }
 0x1ba   :  { %v216_v58 = vmul.f32 0.5, %v213_v56  ;;  %v228_v59 = vmax.f32 %v213_v56, 0.0 }
 0x1bc   :  { %456 = vtanh.f32 %v216_v58  ;;  %241 = vrot.lane.b32.xlu0 %v228_v59, %s465_s11 }
 0x1c0   :  { %223 = vrot.lane.b32.xlu0 %v213_v56, %s465_s11 }
 0x1c6   :  { %v457_v61 = vpop.eup %456 }
 0x1c7   :  { %v218_v63 = vadd.f32 1.0, %v457_v61 }
 0x1c9   :  { %v219_v0 = vmul.f32 0.5, %v218_v63 }
 0x1cb   :  { %v220_v2 = vsub.f32 1.0, %v219_v0 }
 0x1cd   :  { %v221_v3 = vmul.f32 %v220_v2, %v120_v1 }
 0x22e   :  { %v242_v4 = vpop.permute.xlu0 %241 }
 0x22f   :  { %411 = vmatmul.mubr.msk.f32.vlgmr.msra.gmra.mrb[2].mxu0 %vm47_vm0, %v242_v4 }
 0x232   :  { %v224_v5 = vpop.permute.xlu0 %223 }
 0x233   :  { %v226_v6 = vmul.f32 %v224_v5, %v219_v0 }
 0x235   :  { %v227_v7 = vadd.f32 %v226_v6, %v221_v3 }
 0x302   :  { %v311_v9 = vpop.f32.mrb[2].mxu0 }
 0x303   :  { %v312_v10 = vadd.f32 %v343_v8, %v311_v9  ;;  %v412_v11 = vpop.f32.mrb[3].mxu0 }
 0x305   :  { %v316_v12 = vand.u32 2147483647, %v312_v10  ;;  %v315_v23 = vmax.f32 %v312_v10, 0.0 }
 0x307   :  { %v317_v13 = vsub.f32 0.0, %v316_v12 }
 0x309   :  { %v318_v14 = vmul.f32 1.442695, %v317_v13 }
 0x30b   :  { %458 = vpow2.f32 %v318_v14 }
 0x315   :  { %v459_v15 = vpop.eup %458 }
 0x316   :  { %v320_v16 = vadd.f32 1.0, %v459_v15  ;;  %v323_v17 = vmul.f32 -0.5, %v459_v15  ;;  %v326_v19 = vand.u32 2147483647, %v459_v15 }
 0x318   :  { %460 = vlog2.f32 %v320_v16  ;;  %v324_v18 = vadd.f32 1.0, %v323_v17  ;;  %vm327_vm2 = vcmp.lt.f32.partialorder %v326_v19, 0.0004427343 }
 0x31a   :  { %v325_v22 = vmul.f32 %v459_v15, %v324_v18 }
 0x322   :  { %v461_v20 = vpop.eup %460 }
 0x323   :  { %v322_v21 = vmul.f32 0.6931472, %v461_v20 }
 0x325   :  { %v328_v24 = vsel %vm327_vm2, %v325_v22, %v322_v21 }
 0x326   :  { %v329_v25 = vadd.f32 %v328_v24, %v315_v23 }
 0x328   :  { %331 = vrot.lane.b32.xlu1 %v329_v25, %s466_s6 }
 0x39a   :  { %v332_v26 = vpop.permute.xlu1 %331 }
 0x39b   :  { %v334_v27 = vsel %vm47_vm0, %v227_v7, %v332_v26 }
 0x39c   :  { %336 = vst.msk [vmem:[%s629_s7] sm:$0xff] %vm335_vm3, %v334_v27 }

</bundles_post_ra>
